<compile_context>
chip_gen: v7x
topology: tpu7x:2x2x1
jax: 0.10.0
libtpu: 0.0.40
codegen_flags: <defaults>
</compile_context>

<pallas_src>
import jax
import jax.numpy as jnp
from jax.experimental import pallas as pl
from jax.experimental.pallas import tpu as pltpu


LANE = 128          # lane width: feature axes padded to multiples of this
SUBLANE_BF16 = 16   # bf16 packs 16 sublanes per vreg -> batch tile granularity
H_CHUNK = 512       # max hidden-dim chunk processed at once inside the kernel


def _round_up(x: int, m: int) -> int:
    return (x + m - 1) // m * m


def _vmem_capacity_bytes() -> int:
    """Best-effort per-core VMEM capacity; conservative fallback (v7x = 64 MiB)."""
    try:
        cap = getattr(pltpu.get_tpu_info(), "vmem_capacity_bytes", None)
        if cap:
            return int(cap)
    except Exception:
        pass
    return 64 << 20


def _const_index_map(i):
    return (0, 0)


def _batch_index_map(i):
    return (i, 0)


def _resident_spec(shape):
    """Grid-invariant operand: VMEM-resident, single-buffered (no double-buffer)."""
    try:
        return pl.BlockSpec(shape, _const_index_map, pipeline_mode=pl.Buffered(1))
    except Exception:  # older/newer API without pipeline_mode: fall back to default
        return pl.BlockSpec(shape, _const_index_map)


def _make_mlp_kernel(chunk_bounds):
    """chunk_bounds: static tuple of (lo, hi) slices of the hidden dimension."""

    def mlp_kernel(x_ref, w1_ref, b1_ref, w2_ref, b2_ref, o_ref):
        x = x_ref[...]
        acc = None
        for lo, hi in chunk_bounds:
            # fc1 chunk: bf16 MXU matmul, f32 accumulate, f32 bias.
            z1 = jnp.dot(x, w1_ref[:, lo:hi],
                         preferred_element_type=jnp.float32) + b1_ref[:, lo:hi]
            # dropout1 (p=0.5): inference semantics -> identity (no mask/scale).
            # TODO(synk): training-mode dropout (pltpu.prng_seed + prng_random_bits
            # mask with 1/(1-p) scaling) is not emitted here.
            part = jnp.dot(z1.astype(w2_ref.dtype), w2_ref[lo:hi, :],
                           preferred_element_type=jnp.float32)
            acc = part if acc is None else acc + part
        o_ref[...] = (acc + b2_ref[...]).astype(o_ref.dtype)

    return mlp_kernel


def prepare_params(w1, b1, w2, b2):
    """One-time preprocessing: zero-pad feature axes to 128 and cast weights to bf16.

    Hoisted out of the per-call path so each forward does not re-read/re-write
    the weight matrices in HBM.
    """
    D, H = w1.shape
    O = w2.shape[1]
    D_p, H_p, O_p = (_round_up(v, LANE) for v in (D, H, O))
    w1_p = jnp.zeros((D_p, H_p), jnp.bfloat16).at[:D, :H].set(w1.astype(jnp.bfloat16))
    w2_p = jnp.zeros((H_p, O_p), jnp.bfloat16).at[:H, :O].set(w2.astype(jnp.bfloat16))
    b1_p = jnp.zeros((1, H_p), jnp.float32).at[:, :H].set(
        jnp.reshape(b1, (1, H)).astype(jnp.float32))
    b2_p = jnp.zeros((1, O_p), jnp.float32).at[:, :O].set(
        jnp.reshape(b2, (1, O)).astype(jnp.float32))
    return {"w1": w1_p, "b1": b1_p, "w2": w2_p, "b2": b2_p, "dims": (D, H, O)}


def mlp_forward(x, params, out_dtype=jnp.float32):
    """x: [B, D] f32 (or bf16). params: output of prepare_params. Returns [B, O]."""
    D, H, O = params["dims"]
    w1_p, b1_p, w2_p, b2_p = params["w1"], params["b1"], params["w2"], params["b2"]
    D_p, H_p = w1_p.shape
    O_p = w2_p.shape[1]
    B = x.shape[0]
    assert x.shape[1] == D, (x.shape, D)

    out_bytes = jnp.dtype(out_dtype).itemsize
    vmem_cap = _vmem_capacity_bytes()
    # ~48 MiB budget on 64 MiB parts (v7x), ~96 MiB on 128 MiB parts (v5e/v6e).
    vmem_limit = min((vmem_cap * 3) // 4, 112 << 20)

    # Hidden-dim chunking bounds the (tile_b, h_chunk) f32 intermediate.
    h_chunk = min(H_p, H_CHUNK)
    chunk_bounds = tuple((lo, min(lo + h_chunk, H_p)) for lo in range(0, H_p, h_chunk))

    # Batch tile sizing: weights single-buffered & resident; only x/out stream
    # (double-buffered). Per-row VMEM: x (2 bufs, bf16) + out (2 bufs) + z1/acc f32.
    resident = w1_p.nbytes + w2_p.nbytes + b1_p.nbytes + b2_p.nbytes
    per_row = 2 * D_p * 2 + 2 * O_p * out_bytes + h_chunk * 4 + O_p * 4
    budget = vmem_limit - resident - (4 << 20)  # headroom
    # TODO(synk): if the resident weights themselves exceed the VMEM budget, add a
    # hidden/K grid axis ("arbitrary", f32 accumulator + pl.when init/finalize) and
    # stream weight blocks instead of keeping full weights resident.
    tile_cap = 512 if vmem_cap <= (64 << 20) else 1024
    if budget > 0:
        fit = (budget // per_row) // SUBLANE_BF16 * SUBLANE_BF16
        tile_cap = min(tile_cap, max(SUBLANE_BF16, fit))

    n_tiles = max(1, pl.cdiv(B, tile_cap))
    if n_tiles == 1 and B >= 256:
        n_tiles = 2  # give the "parallel" grid >=2 steps so v7x megacore can shard it
    tile_b = _round_up(pl.cdiv(B, n_tiles), SUBLANE_BF16)
    B_p = n_tiles * tile_b

    # Activation: cast to bf16 for the MXU; pad only when actually needed.
    x_b = x.astype(jnp.bfloat16)
    if (B_p, D_p) != (B, D):
        # NOTE: padded batch rows are NOT zero in the output (they get bias terms);
        # they are sliced off below, so results stay correct.
        x_b = jnp.pad(x_b, ((0, B_p - B), (0, D_p - D)))

    flops = 2 * B_p * (D_p * H_p + H_p * O_p)
    bytes_accessed = (x_b.size * 2 + w1_p.nbytes + w2_p.nbytes + b1_p.nbytes
                      + b2_p.nbytes + B_p * O_p * out_bytes)

    out_p = pl.pallas_call(
        _make_mlp_kernel(chunk_bounds),
        out_shape=jax.ShapeDtypeStruct((B_p, O_p), out_dtype),
        grid=(n_tiles,),
        in_specs=[
            pl.BlockSpec((tile_b, D_p), _batch_index_map),  # streamed per batch tile
            _resident_spec((D_p, H_p)),                     # VMEM-resident, 1 buffer
            _resident_spec((1, H_p)),
            _resident_spec((H_p, O_p)),
            _resident_spec((1, O_p)),
        ],
        out_specs=pl.BlockSpec((tile_b, O_p), _batch_index_map),
        compiler_params=pltpu.CompilerParams(
            dimension_semantics=("parallel",),
            vmem_limit_bytes=int(vmem_limit),
        ),
        cost_estimate=pl.CostEstimate(
            flops=flops, transcendentals=0, bytes_accessed=bytes_accessed),
    )(x_b, w1_p, b1_p, w2_p, b2_p)

    if (B_p, O_p) != (B, O):
        out_p = out_p[:B, :O]
    return out_p


def init_params(key, in_features, hidden_size, out_features):
    """Deterministic init mimicking nn.Linear's Kaiming-uniform-ish bounds."""
    k1, k2, k3, k4 = jax.random.split(key, 4)
    bound1 = 1.0 / jnp.sqrt(in_features)
    bound2 = 1.0 / jnp.sqrt(hidden_size)
    w1 = jax.random.uniform(k1, (in_features, hidden_size), jnp.float32,
                            minval=-bound1, maxval=bound1)
    b1 = jax.random.uniform(k2, (1, hidden_size), jnp.float32,
                            minval=-bound1, maxval=bound1)
    w2 = jax.random.uniform(k3, (hidden_size, out_features), jnp.float32,
                            minval=-bound2, maxval=bound2)
    b2 = jax.random.uniform(k4, (1, out_features), jnp.float32,
                            minval=-bound2, maxval=bound2)
    return w1, b1, w2, b2


if __name__ == "__main__":
    batch = 8
    in_features = 32     # LazyLinear infers this from x
    hidden_size = 32
    out_features = 16

    key = jax.random.PRNGKey(0)
    kx, kp = jax.random.split(key)
    x = jax.random.normal(kx, (batch, in_features), jnp.float32)
    w1, b1, w2, b2 = init_params(kp, in_features, hidden_size, out_features)

    params = prepare_params(w1, b1, w2, b2)   # one-time pad + bf16 cast (hoisted)
    logits = mlp_forward(x, params)
    jax.block_until_ready(logits)

    # Reference in plain JAX (dropout is identity in eval mode). Tolerance is
    # loosened because the kernel uses bf16 MXU operands with f32 accumulate.
    ref = (x @ w1 + b1) @ w2 + b2
    assert logits.shape == (batch, out_features), logits.shape
    assert jnp.allclose(logits, ref, atol=3e-2, rtol=3e-2), (
        float(jnp.max(jnp.abs(logits - ref))))

    print("KERNEL_OK")
</pallas_src>

<mosaic_0001>
module attributes {stable_mosaic.version = 11 : i64} {
  func.func @mlp_kernel(%arg0: i32, %arg1: memref<16x128xbf16, #tpu.memory_space<vmem>>, %arg2: memref<128x128xbf16, #tpu.memory_space<vmem>>, %arg3: memref<1x128xf32, #tpu.memory_space<vmem>>, %arg4: memref<128x128xbf16, #tpu.memory_space<vmem>>, %arg5: memref<1x128xf32, #tpu.memory_space<vmem>>, %arg6: memref<16x128xf32, #tpu.memory_space<vmem>>) attributes {dimension_semantics = [#tpu.dimension_semantics<parallel>], iteration_bounds = array<i64: 1>, scalar_prefetch = 0 : i64, scratch_operands = 0 : i64, tpu.core_type = #tpu.core_type<tc>, window_params = [{transform_indices = @transform_0, window_bounds = array<i64: 16, 128>}, {pipeline_mode = #tpu.pipeline_mode<synchronous>, transform_indices = @transform_1, window_bounds = array<i64: 128, 128>}, {pipeline_mode = #tpu.pipeline_mode<synchronous>, transform_indices = @transform_2, window_bounds = array<i64: 1, 128>}, {pipeline_mode = #tpu.pipeline_mode<synchronous>, transform_indices = @transform_3, window_bounds = array<i64: 128, 128>}, {pipeline_mode = #tpu.pipeline_mode<synchronous>, transform_indices = @transform_4, window_bounds = array<i64: 1, 128>}, {transform_indices = @transform_5, window_bounds = array<i64: 16, 128>}]} {
    %c0 = arith.constant 0 : index
    %c0_0 = arith.constant 0 : index
    %0 = vector.load %arg1[%c0, %c0_0] : memref<16x128xbf16, #tpu.memory_space<vmem>>, vector<16x128xbf16>
    %c0_1 = arith.constant 0 : index
    %c0_2 = arith.constant 0 : index
    %1 = vector.load %arg2[%c0_1, %c0_2] : memref<128x128xbf16, #tpu.memory_space<vmem>>, vector<128x128xbf16>
    %cst = arith.constant dense<0.000000e+00> : vector<16x128xf32>
    %2 = tpu.matmul %0, %1, %cst {dimension_numbers = #tpu.dot_dimension_numbers<[1], [0], [0], [1], [0, 0, 1, 1], [], []>} : vector<16x128xbf16>, vector<128x128xbf16>, vector<16x128xf32> -> vector<16x128xf32>
    %c0_3 = arith.constant 0 : index
    %c0_4 = arith.constant 0 : index
    %3 = vector.load %arg3[%c0_3, %c0_4] : memref<1x128xf32, #tpu.memory_space<vmem>>, vector<1x128xf32>
    %4 = vector.broadcast %3 : vector<1x128xf32> to vector<16x128xf32>
    %5 = arith.addf %2, %4 : vector<16x128xf32>
    %6 = arith.truncf %5 : vector<16x128xf32> to vector<16x128xbf16>
    %c0_5 = arith.constant 0 : index
    %c0_6 = arith.constant 0 : index
    %7 = vector.load %arg4[%c0_5, %c0_6] : memref<128x128xbf16, #tpu.memory_space<vmem>>, vector<128x128xbf16>
    %cst_7 = arith.constant dense<0.000000e+00> : vector<16x128xf32>
    %8 = tpu.matmul %6, %7, %cst_7 {dimension_numbers = #tpu.dot_dimension_numbers<[1], [0], [0], [1], [0, 0, 1, 1], [], []>} : vector<16x128xbf16>, vector<128x128xbf16>, vector<16x128xf32> -> vector<16x128xf32>
    %c0_8 = arith.constant 0 : index
    %c0_9 = arith.constant 0 : index
    %9 = vector.load %arg5[%c0_8, %c0_9] : memref<1x128xf32, #tpu.memory_space<vmem>>, vector<1x128xf32>
    %10 = vector.broadcast %9 : vector<1x128xf32> to vector<16x128xf32>
    %11 = arith.addf %8, %10 : vector<16x128xf32>
    %c0_10 = arith.constant 0 : index
    %c0_11 = arith.constant 0 : index
    %12 = vector.load %arg6[%c0_10, %c0_11] : memref<16x128xf32, #tpu.memory_space<vmem>>, vector<16x128xf32>
    tpu.vector_store %arg6[%c0_10, %c0_11], %11 {strides = array<i32>} : memref<16x128xf32, #tpu.memory_space<vmem>>, vector<16x128xf32>,
    return
  }
  func.func @transform_0(%arg0: i32) -> (i32, i32) {
    %c0_i32 = arith.constant 0 : i32
    %c0_i32_0 = arith.constant 0 : i32
    return %arg0, %c0_i32 : i32, i32
  }
  func.func @transform_1(%arg0: i32) -> (i32, i32) {
    %c0_i32 = arith.constant 0 : i32
    %c0_i32_0 = arith.constant 0 : i32
    %c0_i32_1 = arith.constant 0 : i32
    return %c0_i32, %c0_i32_0 : i32, i32
  }
  func.func @transform_2(%arg0: i32) -> (i32, i32) {
    %c0_i32 = arith.constant 0 : i32
    %c0_i32_0 = arith.constant 0 : i32
    %c0_i32_1 = arith.constant 0 : i32
    return %c0_i32, %c0_i32_0 : i32, i32
  }
  func.func @transform_3(%arg0: i32) -> (i32, i32) {
    %c0_i32 = arith.constant 0 : i32
    %c0_i32_0 = arith.constant 0 : i32
    %c0_i32_1 = arith.constant 0 : i32
    return %c0_i32, %c0_i32_0 : i32, i32
  }
  func.func @transform_4(%arg0: i32) -> (i32, i32) {
    %c0_i32 = arith.constant 0 : i32
    %c0_i32_0 = arith.constant 0 : i32
    %c0_i32_1 = arith.constant 0 : i32
    return %c0_i32, %c0_i32_0 : i32, i32
  }
  func.func @transform_5(%arg0: i32) -> (i32, i32) {
    %c0_i32 = arith.constant 0 : i32
    %c0_i32_0 = arith.constant 0 : i32
    return %arg0, %c0_i32 : i32, i32
  }
}

</mosaic_0001>

<bundles_post_ra>
// kernel: tpu_custom_call.1
= control target key start
LH: loop header
LB: loop body
LE: loop exit
PB: predicated region body
PF: predicated region fallthrough
CT: control target
= control target key end

     0   :  { %10 = vsyncpa [#allocation3], 0  ;;  %s624_s0 = inlined_call_operand.hbm [shape: bf16[16,128], index: 0, kind: input, shape index: {}]   ;;  %s625_s1 = inlined_call_operand.hbm [shape: bf16[128,128], index: 1, kind: input, shape index: {}]   ;;  %s626_s2 = inlined_call_operand.vmem [shape: f32[1,128], index: 2, kind: input, shape index: {}]   ;;  %s627_s3 = inlined_call_operand.hbm [shape: bf16[128,128], index: 3, kind: input, shape index: {}]   ;;  %s628_s4 = inlined_call_operand.vmem [shape: f32[1,128], index: 4, kind: input, shape index: {}]   ;;  %s629_s5 = inlined_call_operand.hbm [shape: f32[16,128], index: 5, kind: output, shape index: {}]  }
   0x1   :  { %11 = vsyncpa [#allocation6], 0 }
   0x2   :  { %12 = vsyncpa [#allocation4], 0  ;;  %s514_s18 = smov [#allocation5]   ;;  %s515_s20 = smov [#allocation2]  }
   0x3   :  { %s30_s19 = sshll.u32 %s514_s18, 4  ;;  %s18_s21 = sshll.u32 %s515_s20, 4  ;;  %s31_s19 = int_to_ptr.vmem [resolvable:$true] %s30_s19  ;;  %s554_s21 = int_to_ptr.vmem [resolvable:$true] %s18_s21 }
   0x4   :  { %s420_s24 = scalar_lea.hbm %s625_s1, 1024 }
   0x5   :  { %p421_p0 = scmp.ne.s32.totalorder %s625_s1, %s420_s24  ;;  %p424_p1 = scmp.lt.u32.totalorder %s420_s24, %s625_s1 }
   0x7   :  { %p426_p2 = pnand %p424_p1, %p421_p0 }
   0x9   :  { %429 = shalt.err (!%p426_p2)
}
   0xa   :  { %s430_s29 = scalar_lea.vmem %s31_s19, 1024  ;;  %p435_p4 = scmp.lt.s32.totalorder %s31_s19, %s31_s19 }
   0xb   :  { %p431_p3 = scmp.ne.s32.totalorder %s31_s19, %s430_s29  ;;  %p436_p5 = scmp.lt.s32.totalorder %s430_s29, %s430_s29 }
   0xd   :  { %p437_p6 = por %p436_p5, %p435_p4 }
   0xf   :  { %p438_p7 = pnand %p437_p6, %p431_p3 }
  0x11   :  { %441 = shalt.err (!%p438_p7)
}
  0x12   :  { %s516_s30 = smov 64   ;;  %s517_s6 = smov 4  }
  0x13   :  { %36 = dma.hbm_to_vmem [thread:$0]  %s625_s1, 1024, %s31_s19, [#allocation6], %s516_s30, %s516_s30, %s517_s6  }
  0x14   :  { %s442_s11 = scalar_lea.hbm %s624_s0, 128 }
  0x15   :  { %p443_p8 = scmp.ne.s32.totalorder %s624_s0, %s442_s11  ;;  %p446_p9 = scmp.lt.u32.totalorder %s442_s11, %s624_s0 }
  0x17   :  { %p448_p10 = pnand %p446_p9, %p443_p8 }
  0x19   :  { %451 = shalt.err (!%p448_p10)
}
  0x1a   :  { %s452_s16 = scalar_lea.vmem %s554_s21, 128  ;;  %p457_p12 = scmp.lt.s32.totalorder %s554_s21, %s554_s21 }
  0x1b   :  { %p453_p11 = scmp.ne.s32.totalorder %s554_s21, %s452_s16  ;;  %p458_p13 = scmp.lt.s32.totalorder %s452_s16, %s452_s16 }
  0x1d   :  { %p459_p0 = por %p458_p13, %p457_p12 }
  0x1f   :  { %p460_p1 = pnand %p459_p0, %p453_p11 }
  0x21   :  { %463 = shalt.err (!%p460_p1)
}
  0x22   :  { %24 = dma.hbm_to_vmem [thread:$0]  %s624_s0, 128, %s554_s21, [#allocation3], %s516_s30, %s516_s30, %s517_s6  }
  0x23   :  { %s518_s18 = smov [#allocation7]   ;;  %s464_s23 = scalar_lea.hbm %s627_s3, 1024 }
  0x24   :  { %s44_s19 = sshll.u32 %s518_s18, 4  ;;  %p465_p2 = scmp.ne.s32.totalorder %s627_s3, %s464_s23  ;;  %s45_s19 = int_to_ptr.vmem [resolvable:$true] %s44_s19 }
  0x25   :  { %p468_p3 = scmp.lt.u32.totalorder %s464_s23, %s627_s3 }
  0x27   :  { %p470_p4 = pnand %p468_p3, %p465_p2 }
  0x29   :  { %473 = shalt.err (!%p470_p4)
}
  0x2a   :  { %s474_s28 = scalar_lea.vmem %s45_s19, 1024  ;;  %p479_p6 = scmp.lt.s32.totalorder %s45_s19, %s45_s19 }
  0x2b   :  { %p475_p5 = scmp.ne.s32.totalorder %s45_s19, %s474_s28  ;;  %p480_p7 = scmp.lt.s32.totalorder %s474_s28, %s474_s28 }
  0x2d   :  { %p481_p8 = por %p480_p7, %p479_p6 }
  0x2f   :  { %p482_p9 = pnand %p481_p8, %p475_p5 }
  0x31   :  { %485 = shalt.err (!%p482_p9)
}
  0x32   :  { %50 = dma.hbm_to_vmem [thread:$0]  %s627_s3, 1024, %s45_s19, [#allocation6], %s516_s30, %s516_s30, %s517_s6  }
  0x33   :  { %508 = dma.done.wait [#allocation3], 128  }
  0x34   :  { %509 = vsyncadd [#allocation3], 4294967168 }
  0x35   :  { %510 = dma.done.wait [#allocation6], 2048  }
  0x36   :  { %511 = vsyncadd [#allocation6], 4294965248  ;;  %v519_v0 = vmov 0.0   ;;  %vm520_vm0 = vmmov 0   ;;  %v403_v1 = vld [vmem:[#allocation5] sm:$0xff]   ;;  %v404_v2 = vld [vmem:[#allocation5 + $0x8] sm:$0xff]  }
  0x37   :  { %353 = vmatprep.subr.bf16.mxu0 %v519_v0  ;;  %369 = vmatprep.mubr.msk.bf16.mxu0 %vm520_vm0, %v519_v0  ;;  %v405_v3 = vld [vmem:[#allocation5 + $0x10] sm:$0xff]   ;;  %v412_v4 = vld [vmem:[#allocation7] sm:$0xff]   ;;  %v406_v5 = vld [vmem:[#allocation5 + $0x18] sm:$0xff]   ;;  %s521_s7 = smov [#allocation8]  }
  0x38   :  { %373 = vmatprep.subr.bf16.mxu1 %v519_v0  ;;  %389 = vmatprep.mubr.msk.bf16.mxu1 %vm520_vm0, %v519_v0  ;;  %v413_v6 = vld [vmem:[#allocation7 + $0x8] sm:$0xff]   ;;  %v407_v7 = vld [vmem:[#allocation5 + $0x20] sm:$0xff]   ;;  %v414_v8 = vld [vmem:[#allocation7 + $0x10] sm:$0xff]   ;;  %s303_s8 = sshll.u32 %s521_s7, 4  ;;  %s304_s8 = int_to_ptr.vmem [resolvable:$true] %s303_s8 }
  0x39   :  { %354 = vmatpush3.bf16.msra.mxu0 %v403_v1  ;;  %374 = vmatpush3.bf16.msra.mxu1 %v412_v4  ;;  %v408_v9 = vld [vmem:[#allocation5 + $0x28] sm:$0xff]   ;;  %v415_v10 = vld [vmem:[#allocation7 + $0x18] sm:$0xff]   ;;  %v409_v11 = vld [vmem:[#allocation5 + $0x30] sm:$0xff]   ;;  %p491_p11 = scmp.lt.s32.totalorder %s304_s8, %s304_s8 }
  0x3a   :  { %355 = vmatprep.subr.bf16.mxu0 %v519_v0  ;;  %375 = vmatprep.subr.bf16.mxu1 %v519_v0  ;;  %v416_v12 = vld [vmem:[#allocation7 + $0x20] sm:$0xff]   ;;  %v410_v13 = vld [vmem:[#allocation5 + $0x38] sm:$0xff]   ;;  %v417_v14 = vld [vmem:[#allocation7 + $0x28] sm:$0xff]  }
  0x3b   :  { %v411_v15 = vld [vmem:[#allocation2] sm:$0xff]   ;;  %v418_v16 = vld [vmem:[#allocation7 + $0x30] sm:$0xff]  }
  0x3c   :  { %v419_v17 = vld [vmem:[#allocation7 + $0x38] sm:$0xff]  }
  0x3d   :  { %356 = vmatpush3.bf16.msra.mxu0 %v404_v2  ;;  %376 = vmatpush3.bf16.msra.mxu1 %v413_v6  ;;  %v316_v18 = vld [vmem:[%s626_s2] ss:$0 sm:$0xff]  ;;  %s486_s2 = scalar_lea.vmem %s304_s8, 256 }
  0x3e   :  { %357 = vmatprep.subr.bf16.mxu0 %v519_v0  ;;  %377 = vmatprep.subr.bf16.mxu1 %v519_v0  ;;  %v326_v26 = vld [vmem:[%s628_s4] ss:$0 sm:$0xff]  ;;  %p487_p10 = scmp.ne.s32.totalorder %s304_s8, %s486_s2  ;;  %p492_p12 = scmp.lt.s32.totalorder %s486_s2, %s486_s2 }
  0x40   :  { %p493_p13 = por %p492_p12, %p491_p11 }
  0x41   :  { %358 = vmatpush3.bf16.msra.mxu0 %v405_v3  ;;  %378 = vmatpush3.bf16.msra.mxu1 %v414_v8 }
  0x42   :  { %359 = vmatprep.subr.bf16.mxu0 %v519_v0  ;;  %379 = vmatprep.subr.bf16.mxu1 %v519_v0  ;;  %p494_p0 = pnand %p493_p13, %p487_p10 }
  0x45   :  { %360 = vmatpush3.bf16.msra.mxu0 %v406_v5  ;;  %380 = vmatpush3.bf16.msra.mxu1 %v415_v10 }
  0x46   :  { %361 = vmatprep.subr.bf16.mxu0 %v519_v0  ;;  %381 = vmatprep.subr.bf16.mxu1 %v519_v0 }
  0x49   :  { %362 = vmatpush3.bf16.msra.mxu0 %v407_v7  ;;  %382 = vmatpush3.bf16.msra.mxu1 %v416_v12 }
  0x4a   :  { %363 = vmatprep.subr.bf16.mxu0 %v519_v0  ;;  %383 = vmatprep.subr.bf16.mxu1 %v519_v0 }
  0x4d   :  { %364 = vmatpush3.bf16.msra.mxu0 %v408_v9  ;;  %384 = vmatpush3.bf16.msra.mxu1 %v417_v14 }
  0x4e   :  { %365 = vmatprep.subr.bf16.mxu0 %v519_v0  ;;  %385 = vmatprep.subr.bf16.mxu1 %v519_v0 }
  0x51   :  { %366 = vmatpush3.bf16.msra.mxu0 %v409_v11  ;;  %386 = vmatpush3.bf16.msra.mxu1 %v418_v16 }
  0x52   :  { %367 = vmatprep.subr.bf16.mxu0 %v519_v0  ;;  %387 = vmatprep.subr.bf16.mxu1 %v519_v0 }
  0x55   :  { %368 = vmatpush3.bf16.msra.mxu0 %v410_v13  ;;  %388 = vmatpush3.bf16.msra.mxu1 %v419_v17 }
  0x58   :  { %370 = vmatmul.mubr.bf16.vlgmr.msra.gmra.mrb[0].mxu0 %v411_v15 }
 0x12b   :  { %v176_v19 = vpop.f32.mrb[0].mxu0 }
 0x12c   :  { %v371_v20 = vpop.f32.mrb[1].mxu0  ;;  %v177_v22 = vadd.f32 %v316_v18, %v176_v19 }
 0x12d   :  { %v179_v21 = vpop.f32.mrb[2].mxu0 }
 0x12e   :  { %v180_v23 = vadd.f32 %v316_v18, %v179_v21  ;;  %v372_v24 = vpop.f32.mrb[3].mxu0 }
 0x130   :  { %v183_v25 = vpack.c.bf16 %v180_v23, %v177_v22 }
 0x132   :  { %390 = vmatmul.mubr.bf16.vlgmr.msra.gmra.mrb[0].mxu1 %v183_v25 }
 0x205   :  { %v289_v27 = vpop.f32.mrb[0].mxu1 }
 0x206   :  { %v290_v28 = vadd.f32 %v326_v26, %v289_v27  ;;  %v391_v29 = vpop.f32.mrb[1].mxu1 }
 0x207   :  { %v292_v30 = vpop.f32.mrb[2].mxu1 }
 0x208   :  { %296 = vst [vmem:[#allocation8] sm:$0xff] %v290_v28  ;;  %v293_v31 = vadd.f32 %v326_v26, %v292_v30  ;;  %v392_v32 = vpop.f32.mrb[3].mxu1 }
 0x20a   :  { %297 = vst [vmem:[#allocation8 + $0x8] sm:$0xff] %v293_v31 }
 0x20b   :  { %497 = shalt.err (!%p494_p0)
}
 0x20c   :  { %s498_s10 = scalar_lea.hbm %s629_s5, 256 }
 0x20d   :  { %p499_p1 = scmp.ne.s32.totalorder %s629_s5, %s498_s10  ;;  %p502_p2 = scmp.lt.u32.totalorder %s498_s10, %s629_s5 }
 0x20f   :  { %p504_p3 = pnand %p502_p2, %p499_p1 }
 0x211   :  { %507 = shalt.err (!%p504_p3)
}
 0x212   :  { %s522_s15 = smov 128   ;;  %s523_s16 = smov 8  }
 0x213   :  { %309 = dma.vmem_to_hbm [thread:$0]  %s304_s8, 256, %s629_s5, [#allocation4], %s522_s15, %s522_s15, %s523_s16  }
 0x214   :  { %512 = dma.done.wait [#allocation4], 256  }
 0x215   :  { %513 = vsyncadd [#allocation4], 4294967040 }
 0x216   :  { %313 = vsyncpa [#allocation3], 1 }
 0x217   :  { %314 = vsyncpa [#allocation6], 1 }
 0x218   :  { %315 = vsyncpa [#allocation4], 1 }

</bundles_post_ra>
